<compile_context>
chip_gen: v7x
topology: tpu7x:2x2x1
jax: 0.10.0
libtpu: 0.0.40
codegen_flags: <defaults>
</compile_context>

<pallas_src>
import functools

import jax
import jax.numpy as jnp
from jax import lax
from jax.experimental import pallas as pl
from jax.experimental.pallas import tpu as pltpu


def _length_norm_loss_kernel(emb_ref, tgt_ref, psum_ref, *, vocab_size, batch):
    """Per batch tile: sum over valid rows of (||emb_b||_2 - seq_len_b)^2."""
    tb = emb_ref.shape[0]

    # --- embedding L2 norms along hidden dim (upcast in VMEM; handles bf16) ---
    emb = emb_ref[...].astype(jnp.float32)                        # (tb, D)
    sq_sum = jnp.sum(emb * emb, axis=1, keepdims=True)            # (tb, 1)
    norms = jnp.sqrt(sq_sum)                                      # (tb, 1)

    # --- sequence lengths: tokens != vocab-1 and != vocab-2 (constants fold) ---
    tgt = tgt_ref[...]                                            # (tb, S) int
    keep = (tgt != vocab_size - 1) & (tgt != vocab_size - 2)
    lengths = jnp.sum(keep.astype(jnp.int32), axis=1,
                      keepdims=True).astype(jnp.float32)          # (tb, 1)

    diff = norms - lengths
    sqerr = diff * diff                                           # (tb, 1)

    # Mask padded (out-of-batch) rows of a partial last tile before reducing:
    # their garbage contents must not contaminate the per-tile partial sum.
    row = lax.broadcasted_iota(jnp.int32, (tb, 1), 0) + pl.program_id(0) * tb
    partial = jnp.sum(jnp.where(row < batch, sqerr, 0.0))         # scalar

    # One partial sum per grid step, placed at [0,0] of a lane-dense (8,128)
    # block (unmasked vst); remaining elements are zero so a plain sum of the
    # whole output recovers the total.
    r = lax.broadcasted_iota(jnp.int32, (8, 128), 0)
    c = lax.broadcasted_iota(jnp.int32, (8, 128), 1)
    psum_ref[...] = jnp.where((r == 0) & (c == 0), partial, 0.0)


def _round_up(x, m):
    return ((x + m - 1) // m) * m


def _target_tile_bytes():
    """Generation-aware combined-input tile budget (single buffer, both inputs)."""
    kind = ""
    try:
        kind = jax.devices()[0].device_kind.lower()
    except Exception:
        pass
    if "v5 lite" in kind or "v5lite" in kind or "v5e" in kind:
        # v5e: 16 MiB default scoped VMEM; 2x double-buffering must fit inside.
        return 6 * 1024 * 1024
    # v6e / v7x: 32 MiB scoped default (64 MiB physical on v7x) and faster HBM,
    # so bigger tiles amortize the fixed ~0.35 us/step overhead.
    return 12 * 1024 * 1024


def _choose_tile_rows(B, D, S, emb_itemsize, tgt_itemsize):
    """Batch tile size: large enough to amortize per-step grid overhead, small
    enough that 2 inputs x 2 double-buffers fit scoped VMEM; multiple of 32."""
    bytes_per_row = D * emb_itemsize + S * tgt_itemsize
    tb = _target_tile_bytes() // max(bytes_per_row, 1)
    if tb >= B:
        # Split into >=2 tiles when possible so ("parallel",) can shard across
        # both v7x TensorCores (nearly free for this streaming kernel);
        # otherwise one full block (full-dim exception to the (8,128) rule).
        half = _round_up((B + 1) // 2, 32)
        return half if half < B else B
    return max(32, (tb // 32) * 32)


def length_norm_loss(embeddings, targets, vocab_size, *, tile_rows=None):
    """Pallas TPU implementation of LengthNormLoss.forward.

    embeddings: (B, D) float (f32 / bf16)
    targets:    (B, S) int
    vocab_size: python int (static)
    returns: scalar float32 loss
    """
    B, D = embeddings.shape
    _, S = targets.shape
    vocab_size = int(vocab_size)

    emb_isz = embeddings.dtype.itemsize
    tgt_isz = targets.dtype.itemsize

    if tile_rows is None:
        tb = _choose_tile_rows(B, D, S, emb_isz, tgt_isz)
    else:
        tb = int(tile_rows)
        if tb < B and tb % 8 != 0:
            raise ValueError("tile_rows must be a multiple of 8 (or >= batch).")
    tb = min(tb, B)
    num_tiles = pl.cdiv(B, tb)

    # Scoped-VMEM budget consistent with the tile choice: double-buffered inputs
    # + output block + headroom; never below the smallest default (16 MiB) and
    # never beyond v7x's 64 MiB physical VMEM.
    tile_bytes = tb * D * emb_isz + tb * S * tgt_isz
    vmem_limit = 2 * tile_bytes + 2 * (8 * 128 * 4) + (4 << 20)
    vmem_limit = max(vmem_limit, 16 << 20)
    vmem_limit = min(vmem_limit, 48 << 20)

    cost = pl.CostEstimate(
        flops=3 * B * D + 3 * B * S + 4 * B,
        transcendentals=B,                                   # one sqrt per row
        bytes_accessed=B * D * emb_isz + B * S * tgt_isz
        + num_tiles * 8 * 128 * 4,
    )

    partials = pl.pallas_call(
        functools.partial(_length_norm_loss_kernel,
                          vocab_size=vocab_size, batch=B),
        out_shape=jax.ShapeDtypeStruct((num_tiles * 8, 128), jnp.float32),
        grid=(num_tiles,),
        in_specs=[
            pl.BlockSpec((tb, D), lambda i: (i, 0)),         # embeddings tile
            pl.BlockSpec((tb, S), lambda i: (i, 0)),         # targets tile
        ],
        out_specs=pl.BlockSpec((8, 128), lambda i: (i, 0)),  # per-tile partial sum
        compiler_params=pltpu.CompilerParams(
            dimension_semantics=("parallel",),               # megacore-shardable
            vmem_limit_bytes=int(vmem_limit),
        ),
        cost_estimate=cost,
    )(embeddings, targets)

    # Tiny follow-up: num_tiles scalars -> mean over B rows.
    return jnp.sum(partials) / B


def _reference(embeddings, targets, vocab_size):
    ref_norms = jnp.linalg.norm(embeddings.astype(jnp.float32), axis=1)
    ref_lens = jnp.sum(
        (targets != vocab_size - 1) & (targets != vocab_size - 2), axis=1
    ).astype(jnp.float32)
    return jnp.mean((ref_norms - ref_lens) ** 2)


if __name__ == "__main__":
    key = jax.random.PRNGKey(0)
    k_emb, k_tgt, k_emb2, k_tgt2 = jax.random.split(key, 4)

    VOCAB = 11

    # --- small primary check (single full block, auto tile choice) ---
    B, D, S = 4, 32, 8
    embeddings = jax.random.normal(k_emb, (B, D), dtype=jnp.float32)
    targets = jax.random.randint(k_tgt, (B, S), 0, VOCAB, dtype=jnp.int32)

    loss = length_norm_loss(embeddings, targets, VOCAB)
    jax.block_until_ready(loss)
    ref = _reference(embeddings, targets, VOCAB)
    assert jnp.allclose(loss, ref, rtol=1e-5, atol=1e-5), (loss, ref)

    # --- tiled-path check: multiple grid steps + masked partial last tile ---
    B2, D2, S2 = 20, 32, 8
    embeddings2 = jax.random.normal(k_emb2, (B2, D2), dtype=jnp.float32)
    targets2 = jax.random.randint(k_tgt2, (B2, S2), 0, VOCAB, dtype=jnp.int32)

    loss2 = length_norm_loss(embeddings2, targets2, VOCAB, tile_rows=8)
    jax.block_until_ready(loss2)
    ref2 = _reference(embeddings2, targets2, VOCAB)
    assert jnp.allclose(loss2, ref2, rtol=1e-5, atol=1e-5), (loss2, ref2)

    # --- bf16 embeddings (halves the dominant HBM stream; upcast in-kernel) ---
    embeddings3 = embeddings2.astype(jnp.bfloat16)
    loss3 = length_norm_loss(embeddings3, targets2, VOCAB, tile_rows=16)
    jax.block_until_ready(loss3)
    ref3 = _reference(embeddings3, targets2, VOCAB)
    assert jnp.allclose(loss3, ref3, rtol=1e-3, atol=1e-3), (loss3, ref3)

    print("KERNEL_OK")
</pallas_src>

<mosaic_0001>
module attributes {stable_mosaic.version = 11 : i64} {
  func.func @_length_norm_loss_kernel(%arg0: i32, %arg1: memref<4x32xf32, #tpu.memory_space<vmem>>, %arg2: memref<4x8xi32, #tpu.memory_space<vmem>>, %arg3: memref<8x128xf32, #tpu.memory_space<vmem>>) attributes {dimension_semantics = [#tpu.dimension_semantics<parallel>], iteration_bounds = array<i64: 1>, scalar_prefetch = 0 : i64, scratch_operands = 0 : i64, tpu.core_type = #tpu.core_type<tc>, window_params = [{transform_indices = @transform_0, window_bounds = array<i64: 4, 32>}, {transform_indices = @transform_1, window_bounds = array<i64: 4, 8>}, {transform_indices = @transform_2, window_bounds = array<i64: 8, 128>}]} {
    %c0 = arith.constant 0 : index
    %c0_0 = arith.constant 0 : index
    %0 = vector.load %arg1[%c0, %c0_0] : memref<4x32xf32, #tpu.memory_space<vmem>>, vector<4x32xf32>
    %1 = arith.mulf %0, %0 : vector<4x32xf32>
    %cst = arith.constant dense<0.000000e+00> : vector<4xf32>
    %2 = vector.multi_reduction <add>, %1, %cst [1] : vector<4x32xf32> to vector<4xf32>
    %3 = vector.shape_cast %2 : vector<4xf32> to vector<4x1xf32>
    %4 = math.sqrt %3 : vector<4x1xf32>
    %c0_1 = arith.constant 0 : index
    %c0_2 = arith.constant 0 : index
    %5 = vector.load %arg2[%c0_1, %c0_2] : memref<4x8xi32, #tpu.memory_space<vmem>>, vector<4x8xi32>
    %c10_i32 = arith.constant 10 : i32
    %6 = vector.broadcast %c10_i32 : i32 to vector<4x8xi32>
    %7 = arith.cmpi ne, %5, %6 : vector<4x8xi32>
    %c9_i32 = arith.constant 9 : i32
    %8 = vector.broadcast %c9_i32 : i32 to vector<4x8xi32>
    %9 = arith.cmpi ne, %5, %8 : vector<4x8xi32>
    %10 = arith.andi %7, %9 : vector<4x8xi1>
    %11 = arith.extui %10 : vector<4x8xi1> to vector<4x8xi32>
    %cst_3 = arith.constant dense<0> : vector<4xi32>
    %12 = vector.multi_reduction <add>, %11, %cst_3 [1] : vector<4x8xi32> to vector<4xi32>
    %13 = vector.shape_cast %12 : vector<4xi32> to vector<4x1xi32>
    %14 = arith.sitofp %13 : vector<4x1xi32> to vector<4x1xf32>
    %15 = arith.subf %4, %14 : vector<4x1xf32>
    %16 = arith.mulf %15, %15 : vector<4x1xf32>
    %17 = tpu.iota {dimensions = array<i32: 0>} : vector<4x1xi32>
    %c4_i32 = arith.constant 4 : i32
    %18 = arith.muli %arg0, %c4_i32 : i32
    %19 = vector.broadcast %18 : i32 to vector<4x1xi32>
    %20 = arith.addi %17, %19 : vector<4x1xi32>
    %c4_i32_4 = arith.constant 4 : i32
    %21 = vector.broadcast %c4_i32_4 : i32 to vector<4x1xi32>
    %22 = arith.cmpi slt, %20, %21 : vector<4x1xi32>
    %cst_5 = arith.constant 0.000000e+00 : f32
    %23 = vector.broadcast %cst_5 : f32 to vector<4x1xf32>
    %24 = arith.select %22, %16, %23 : vector<4x1xi1>, vector<4x1xf32>
    %25 = vector.shape_cast %24 : vector<4x1xf32> to vector<1x4x1xf32>
    %cst_6 = arith.constant dense<0.000000e+00> : vector<1xf32>
    %26 = vector.multi_reduction <add>, %25, %cst_6 [1, 2] : vector<1x4x1xf32> to vector<1xf32>
    %27 = vector.shape_cast %26 : vector<1xf32> to vector<1x1x1xf32>
    %28 = vector.extract %27[0, 0, 0] : f32 from vector<1x1x1xf32>
    %29 = tpu.iota {dimensions = array<i32: 0>} : vector<8x128xi32>
    %30 = tpu.iota {dimensions = array<i32: 1>} : vector<8x128xi32>
    %c0_i32 = arith.constant 0 : i32
    %31 = vector.broadcast %c0_i32 : i32 to vector<8x128xi32>
    %32 = arith.cmpi eq, %29, %31 : vector<8x128xi32>
    %c0_i32_7 = arith.constant 0 : i32
    %33 = vector.broadcast %c0_i32_7 : i32 to vector<8x128xi32>
    %34 = arith.cmpi eq, %30, %33 : vector<8x128xi32>
    %35 = arith.andi %32, %34 : vector<8x128xi1>
    %cst_8 = arith.constant 0.000000e+00 : f32
    %36 = vector.broadcast %28 : f32 to vector<8x128xf32>
    %37 = vector.broadcast %cst_8 : f32 to vector<8x128xf32>
    %38 = arith.select %35, %36, %37 : vector<8x128xi1>, vector<8x128xf32>
    %c0_9 = arith.constant 0 : index
    %c0_10 = arith.constant 0 : index
    %39 = vector.load %arg3[%c0_9, %c0_10] : memref<8x128xf32, #tpu.memory_space<vmem>>, vector<8x128xf32>
    tpu.vector_store %arg3[%c0_9, %c0_10], %38 {strides = array<i32>} : memref<8x128xf32, #tpu.memory_space<vmem>>, vector<8x128xf32>,
    return
  }
  func.func @transform_0(%arg0: i32) -> (i32, i32) {
    %c0_i32 = arith.constant 0 : i32
    %c0_i32_0 = arith.constant 0 : i32
    return %arg0, %c0_i32 : i32, i32
  }
  func.func @transform_1(%arg0: i32) -> (i32, i32) {
    %c0_i32 = arith.constant 0 : i32
    %c0_i32_0 = arith.constant 0 : i32
    return %arg0, %c0_i32 : i32, i32
  }
  func.func @transform_2(%arg0: i32) -> (i32, i32) {
    %c0_i32 = arith.constant 0 : i32
    %c0_i32_0 = arith.constant 0 : i32
    return %arg0, %c0_i32 : i32, i32
  }
}

</mosaic_0001>

<bundles_post_ra>
// kernel: tpu_custom_call.1
= control target key start
LH: loop header
LB: loop body
LE: loop exit
PB: predicated region body
PF: predicated region fallthrough
CT: control target
= control target key end

     0   :  { %7 = vsyncpa [#allocation3], 0  ;;  %s248_s0 = inlined_call_operand.hbm [shape: f32[4,32], index: 0, kind: input, shape index: {}]   ;;  %s249_s1 = inlined_call_operand.hbm [shape: s32[4,8], index: 1, kind: input, shape index: {}]   ;;  %s250_s2 = inlined_call_operand.hbm [shape: f32[8,128], index: 2, kind: output, shape index: {}]  }
   0x1   :  { %8 = vsyncpa [#allocation6], 0 }
   0x2   :  { %9 = vsyncpa [#allocation4], 0  ;;  %s193_s9 = smov [#allocation2]   ;;  %s194_s11 = smov [#allocation5]  }
   0x3   :  { %s16_s10 = sshll.u32 %s193_s9, 4  ;;  %s26_s12 = sshll.u32 %s194_s11, 4  ;;  %s17_s10 = int_to_ptr.vmem [resolvable:$true] %s16_s10  ;;  %s27_s12 = int_to_ptr.vmem [resolvable:$true] %s26_s12 }
   0x4   :  { %s121_s15 = scalar_lea.hbm %s248_s0, 64 }
   0x5   :  { %p122_p0 = scmp.ne.s32.totalorder %s248_s0, %s121_s15  ;;  %p125_p1 = scmp.lt.u32.totalorder %s121_s15, %s248_s0 }
   0x7   :  { %p127_p2 = pnand %p125_p1, %p122_p0 }
   0x9   :  { %130 = shalt.err (!%p127_p2)
}
   0xa   :  { %s131_s20 = scalar_lea.vmem %s17_s10, 64  ;;  %p136_p4 = scmp.lt.s32.totalorder %s17_s10, %s17_s10 }
   0xb   :  { %p132_p3 = scmp.ne.s32.totalorder %s17_s10, %s131_s20  ;;  %p137_p5 = scmp.lt.s32.totalorder %s131_s20, %s131_s20 }
   0xd   :  { %p138_p6 = por %p137_p5, %p136_p4 }
   0xf   :  { %p139_p7 = pnand %p138_p6, %p132_p3 }
  0x11   :  { %142 = shalt.err (!%p139_p7)
}
  0x12   :  { %19 = dma.hbm_to_vmem [thread:$0]  %s248_s0, 64, %s17_s10, [#allocation3]  }
  0x13   :  { %s143_s25 = scalar_lea.hbm %s249_s1, 64 }
  0x14   :  { %p144_p8 = scmp.ne.s32.totalorder %s249_s1, %s143_s25  ;;  %p147_p9 = scmp.lt.u32.totalorder %s143_s25, %s249_s1 }
  0x16   :  { %p149_p10 = pnand %p147_p9, %p144_p8 }
  0x18   :  { %152 = shalt.err (!%p149_p10)
}
  0x19   :  { %s153_s30 = scalar_lea.vmem %s27_s12, 64  ;;  %p158_p12 = scmp.lt.s32.totalorder %s27_s12, %s27_s12 }
  0x1a   :  { %p154_p11 = scmp.ne.s32.totalorder %s27_s12, %s153_s30  ;;  %p159_p13 = scmp.lt.s32.totalorder %s153_s30, %s153_s30 }
  0x1c   :  { %p160_p0 = por %p159_p13, %p158_p12 }
  0x1e   :  { %p161_p1 = pnand %p160_p0, %p154_p11 }
  0x20   :  { %164 = shalt.err (!%p161_p1)
}
  0x21   :  { %29 = dma.hbm_to_vmem [thread:$0]  %s249_s1, 64, %s27_s12, [#allocation6]  }
  0x22   :  { %187 = dma.done.wait [#allocation3], 64  }
  0x23   :  { %188 = vsyncadd [#allocation3], 4294967232 }
  0x24   :  { %189 = dma.done.wait [#allocation6], 64  }
  0x25   :  { %190 = vsyncadd [#allocation6], 4294967232  ;;  %v36_v0 = vld [vmem:[#allocation2] sm:$0xf]  ;;  %vm38_vm0 = vcmask 257024   ;;  %vm54_vm3 = vcmask 60416   ;;  %v71_v17 = vlaneseq }
  0x26   :  { %v49_v1 = vld [vmem:[#allocation5] sm:$0xf]  ;;  %v37_v2 = vmul.f32 %v36_v0, %v36_v0  ;;  %v195_v4 = vmov 0   ;;  %vm78_vm8 = vcmask 3072   ;;  %s196_s1 = smov [#allocation7]  }
  0x27   :  { %vm50_vm1 = vcmp.ne.s32.totalorder %v49_v1, 10  ;;  %vm51_vm2 = vcmp.ne.s32.totalorder %v49_v1, 9  ;;  %v72_v23 = vshrl.u32 %v71_v17, 7  ;;  %v90_v37 = vand.u32 127, %v71_v17  ;;  %s103_s4 = sshll.u32 %s196_s1, 4  ;;  %s104_s4 = int_to_ptr.vmem [resolvable:$true] %s103_s4 }
  0x28   :  { %vm52_vm4 = vmand %vm50_vm1, %vm51_vm2  ;;  %v39_v3 = vsel %vm38_vm0, %v37_v2, 0.0  ;;  %s165_s6 = scalar_lea.vmem %s104_s4, 128  ;;  %p170_p3 = scmp.lt.s32.totalorder %s104_s4, %s104_s4 }
  0x29   :  { %v53_v5 = vsel %vm52_vm4, 1, %v195_v4  ;;  %40 = vadd.xlane.f32.xlu0 %v39_v3  ;;  %vm76_vm7 = vcmp.lt.s32.totalorder %v72_v23, 4  ;;  %vm91_vm9 = vcmp.eq.s32.totalorder %v72_v23, 0  ;;  %vm92_vm10 = vcmp.eq.s32.totalorder %v90_v37, 0  ;;  %p166_p2 = scmp.ne.s32.totalorder %s104_s4, %s165_s6  ;;  %p171_p4 = scmp.lt.s32.totalorder %s165_s6, %s165_s6 }
  0x2a   :  { %v55_v6 = vsel %vm54_vm3, %v53_v5, 0  ;;  %vm93_vm11 = vmand %vm91_vm9, %vm92_vm10 }
  0x2b   :  { %v57_v7 = vshrl.u32 %v55_v6, 16  ;;  %v56_v8 = vand.u32 65535, %v55_v6  ;;  %p172_p5 = por %p171_p4, %p170_p3 }
  0x2d   :  { %v59_v9 = vcvt.s32.f32 %v57_v7  ;;  %v58_v10 = vcvt.s32.f32 %v56_v8  ;;  %p173_p6 = pnand %p172_p5, %p166_p2 }
  0x2f   :  { %62 = vadd.xlane.f32.xlu0 %v59_v9  ;;  %60 = vadd.xlane.f32.xlu1 %v58_v10 }
  0xb6   :  { %v41_v11 = vpop.xlane.xlu0 %40 }
  0xb7   :  { %119 = vrsqrt.f32 %v41_v11  ;;  %vm44_vm5 = vcmp.eq.f32.partialorder %v41_v11, inf  ;;  %v47_v22 = vand.u32 2147483648, %v41_v11  ;;  %vm46_vm6 = vcmp.eq.f32.partialorder %v41_v11, 0.0 }
  0xbc   :  { %v63_v12 = vpop.xlane.xlu0 %62  ;;  %v61_v13 = vpop.xlane.xlu1 %60 }
  0xbd   :  { %v65_v14 = vcvt.f32.s32 %v63_v12  ;;  %v64_v15 = vcvt.f32.s32 %v61_v13 }
  0xbf   :  { %v66_v16 = vshll.u32 %v65_v14, 16 }
  0xc1   :  { %v67_v18 = vadd.s32 %v66_v16, %v64_v15  ;;  %v120_v19 = vpop.eup %119 }
  0xc2   :  { %v43_v21 = vmul.f32 %v120_v19, %v41_v11 }
  0xc3   :  { %v68_v20 = vcvt.s32.f32 %v67_v18 }
  0xc4   :  { %v45_v24 = vsel %vm44_vm5, %v41_v11, %v43_v21 }
  0xc5   :  { %v48_v25 = vsel %vm46_vm6, %v47_v22, %v45_v24 }
  0xc6   :  { %v69_v26 = vsub.f32 %v48_v25, %v68_v20 }
  0xc8   :  { %v70_v27 = vmul.f32 %v69_v26, %v69_v26 }
  0xca   :  { %v77_v28 = vsel %vm76_vm7, %v70_v27, 0.0 }
  0xcb   :  { %v79_v29 = vsel %vm78_vm8, %v77_v28, 0.0 }
  0xcc   :  { %80 = vadd.xlane.f32.xlu1 %v79_v29 }
 0x159   :  { %v81_v30 = vpop.xlane.xlu1 %80 }
 0x15a   :  { %v82_v31 = vrot.slane %v81_v30, 4 }
 0x15c   :  { %v83_v32 = vadd.f32 %v82_v31, %v81_v30 }
 0x15e   :  { %v84_v33 = vrot.slane %v83_v32, 2 }
 0x160   :  { %v85_v34 = vadd.f32 %v84_v33, %v83_v32 }
 0x162   :  { %v86_v35 = vrot.slane %v85_v34, 1 }
 0x164   :  { %v87_v36 = vadd.f32 %v86_v35, %v85_v34 }
 0x166   :  { %113 = vpush %v87_v36 }
 0x197   :  { %s114_s5 = spop %113 }
 0x198   :  { %v94_v38 = vstv %s114_s5 }
 0x199   :  { %v95_v39 = vsel %vm93_vm11, %v94_v38, 0.0 }
 0x19a   :  { %96 = vst [vmem:[#allocation7] sm:$0xff] %v95_v39 }
 0x19b   :  { %176 = shalt.err (!%p173_p6)
}
 0x19c   :  { %s177_s9 = scalar_lea.hbm %s250_s2, 128 }
 0x19d   :  { %p178_p7 = scmp.ne.s32.totalorder %s250_s2, %s177_s9  ;;  %p181_p8 = scmp.lt.u32.totalorder %s177_s9, %s250_s2 }
 0x19f   :  { %p183_p9 = pnand %p181_p8, %p178_p7 }
 0x1a1   :  { %186 = shalt.err (!%p183_p9)
}
 0x1a2   :  { %106 = dma.vmem_to_hbm [thread:$0]  %s104_s4, 128, %s250_s2, [#allocation4]  }
 0x1a3   :  { %191 = dma.done.wait [#allocation4], 128  }
 0x1a4   :  { %192 = vsyncadd [#allocation4], 4294967168 }
 0x1a5   :  { %110 = vsyncpa [#allocation3], 1 }
 0x1a6   :  { %111 = vsyncpa [#allocation6], 1 }
 0x1a7   :  { %112 = vsyncpa [#allocation4], 1 }

</bundles_post_ra>
